<compile_context>
chip_gen: v7x
topology: tpu7x:2x2x1
jax: 0.10.0
libtpu: 0.0.40
codegen_flags: <defaults>
</compile_context>

<pallas_src>
import functools
import math

import jax
import jax.numpy as jnp
import numpy as np
from jax.experimental import pallas as pl
from jax.experimental.pallas import tpu as pltpu


def _round_up(x, m):
    return ((x + m - 1) // m) * m


def _cdiv(a, b):
    return (a + b - 1) // b


def _itemsize(dtype):
    return np.dtype(dtype).itemsize


def _sublane_multiple(dtype):
    # packed-sublane multiple: 8 for 4-byte, 16 for 2-byte, 32 for 1-byte dtypes
    return 8 * max(1, 4 // _itemsize(dtype))


def _vmem_budget_bytes():
    """Per-core VMEM budget: physical capacity minus ~25% headroom for Mosaic
    internal scratch / semaphores (v7x: 64 MiB -> 48, v5e/v6e: 128 -> 96)."""
    cap = 64 * 1024 * 1024  # conservative fallback == v7x physical
    try:
        info = pltpu.get_tpu_info()
        cap = int(getattr(info, "vmem_capacity_bytes", cap))
    except Exception:
        pass
    return (cap * 3) // 4


@functools.lru_cache(maxsize=None)
def _buffered_constants_supported():
    """Probe whether BlockSpec(pipeline_mode=pl.Buffered(1)) is supported (and
    numerically correct) on this Pallas/Mosaic build.  Used to single-buffer
    the grid-constant operands; falls back to default double-buffering."""
    try:
        def k(c_ref, x_ref, o_ref):
            o_ref[...] = x_ref[...] + c_ref[...]

        c = jnp.ones((8, 128), jnp.float32)
        x = jnp.arange(16 * 128, dtype=jnp.float32).reshape(16, 128)
        out = pl.pallas_call(
            k,
            out_shape=jax.ShapeDtypeStruct((16, 128), jnp.float32),
            grid=(2,),
            in_specs=[
                pl.BlockSpec((8, 128), lambda i: (0, 0),
                             pipeline_mode=pl.Buffered(buffer_count=1)),
                pl.BlockSpec((8, 128), lambda i: (i, 0)),
            ],
            out_specs=pl.BlockSpec((8, 128), lambda i: (i, 0)),
        )(c, x)
        return bool(jnp.allclose(jax.block_until_ready(out), x + 1.0))
    except Exception:
        return False


def _mim_head_kernel(x_ref, w1_ref, b1_ref, g_ref, beta_ref, w2_ref, b2_ref,
                     o_ref, h_scratch, *, eps):
    j = pl.program_id(1)

    # dense -> GELU -> LayerNorm runs once per row tile (first V tile only);
    # the result is cached in VMEM in the matmul dtype and reused for every
    # other V tile.  Correct because the V axis is the innermost, sequentially
    # executed ("arbitrary") grid axis (row axis is the core-sharded one).
    @pl.when(j == 0)
    def _():
        x = x_ref[...]                              # (tm, H) matmul dtype
        h = jnp.dot(x, w1_ref[...],                 # MXU, f32 accumulation
                    preferred_element_type=jnp.float32)
        h = h + b1_ref[...]                         # f32

        # exact GELU (PyTorch nn.GELU default uses erf)
        h = 0.5 * h * (1.0 + jax.lax.erf(h * (1.0 / math.sqrt(2.0))))

        # LayerNorm over the hidden (lane) axis, f32 math
        mean = jnp.mean(h, axis=-1, keepdims=True)
        centered = h - mean
        var = jnp.mean(centered * centered, axis=-1, keepdims=True)
        h = centered * jax.lax.rsqrt(var + eps)
        h = h * g_ref[...] + beta_ref[...]
        h_scratch[...] = h.astype(h_scratch.dtype)  # single cast, outside loop

    # decoder: h @ W2_tile + bias_tile, f32 accumulation on the MXU.
    out = jnp.dot(h_scratch[...], w2_ref[...], preferred_element_type=jnp.float32)
    out = out + b2_ref[...]
    o_ref[...] = out.astype(o_ref.dtype)


def _pick_tiles(N, H, V, mm_dtype, out_dtype, row_tile, v_tile, budget, const_bufs):
    mm_b = _itemsize(mm_dtype)
    out_b = _itemsize(out_dtype)
    sub = _sublane_multiple(mm_dtype)

    # Vocab (lane) tile: full V if it fits, else a lane-dense multiple of
    # 256 (v6e/v7x MXU N-width) or at least 128.
    if V <= v_tile:
        tn = V
        tn_min = V
    else:
        t = min(v_tile, V)
        tn = (t // 256) * 256 if t >= 256 else max(128, (t // 128) * 128)
        tn_min = 128

    # Row tile: as large as requested (rounded to the packed-sublane multiple),
    # never larger than padded N, and keep >= 2 row tiles whenever possible so
    # both v7x TensorCores get work on the "parallel" axis.
    tm = min(_round_up(row_tile, sub), _round_up(N, sub))
    if N > sub and _cdiv(N, tm) < 2:
        tm = max(sub, _round_up(_cdiv(N, 2), sub))

    def vmem_bytes(tm_, tn_):
        x_tile = 2 * tm_ * H * mm_b                 # double-buffered row tile
        w1 = const_bufs * H * H * mm_b              # dense weight (constant)
        vecs = const_bufs * 3 * H * 4               # b1, gamma, beta (f32)
        w2_tile = 2 * H * tn_ * mm_b                # double-buffered decoder tile
        b2_tile = 2 * tn_ * 4
        o_tile = 2 * tm_ * tn_ * out_b              # double-buffered out tile
        scratch = tm_ * H * mm_b                    # post-LN cache
        return x_tile + w1 + vecs + w2_tile + b2_tile + o_tile + scratch

    # Shrink tn first (total w2 HBM traffic does not depend on tn), then tm.
    while vmem_bytes(tm, tn) > budget:
        if tn > tn_min and tn // 2 >= 128 and (tn // 2) % 128 == 0:
            tn //= 2
        elif tm > sub:
            tm = max(sub, _round_up(tm // 2, sub))
        else:
            break
    return tm, tn


def head_for_mim(hidden_states, params, *, eps=1e-5, row_tile=1024, v_tile=1024,
                 compute_dtype=None):
    """hidden_states: [B, S, H] -> logits [B, S, V].

    eps must match config.layer_norm_eps of the checkpoint.
    compute_dtype: optional matmul dtype (e.g. jnp.bfloat16) so f32 callers can
    opt into the fast bf16 MXU path (f32 accumulation is kept either way).
    """
    B, S, H = hidden_states.shape
    in_dtype = hidden_states.dtype
    mm_dtype = np.dtype(compute_dtype) if compute_dtype is not None else in_dtype

    # Matmul operands in the matmul dtype (bf16 -> fast MXU path); small
    # per-channel parameters stay f32 for the f32 GELU/LayerNorm math.
    w1 = params["w1"].astype(mm_dtype)                    # (H, H), pre-transposed
    w2 = params["w2"].astype(mm_dtype)                    # (H, V), pre-transposed
    V = w2.shape[1]
    b1 = params["b1"].astype(jnp.float32).reshape(1, H)
    gamma = params["gamma"].astype(jnp.float32).reshape(1, H)
    beta = params["beta"].astype(jnp.float32).reshape(1, H)
    b2 = params["b2"].astype(jnp.float32).reshape(1, V)

    N = B * S
    x2d = hidden_states.reshape(N, H).astype(mm_dtype)

    budget = _vmem_budget_bytes()
    const_bufs = 1 if _buffered_constants_supported() else 2
    tm, tn = _pick_tiles(N, H, V, mm_dtype, in_dtype, row_tile, v_tile,
                         budget, const_bufs)

    N_pad = _round_up(N, tm)
    if N_pad != N:
        x2d = jnp.pad(x2d, ((0, N_pad - N), (0, 0)))
    V_pad = _round_up(V, tn)
    if V_pad != V:
        w2 = jnp.pad(w2, ((0, 0), (0, V_pad - V)))
        b2 = jnp.pad(b2, ((0, 0), (0, V_pad - V)))

    const_kw = ({"pipeline_mode": pl.Buffered(buffer_count=1)}
                if const_bufs == 1 else {})

    grid = (N_pad // tm, V_pad // tn)
    kernel = functools.partial(_mim_head_kernel, eps=eps)

    out2d = pl.pallas_call(
        kernel,
        out_shape=jax.ShapeDtypeStruct((N_pad, V_pad), in_dtype),
        grid_spec=pltpu.PrefetchScalarGridSpec(
            num_scalar_prefetch=0,
            grid=grid,
            in_specs=[
                pl.BlockSpec((tm, H), lambda i, j: (i, 0)),             # x rows
                pl.BlockSpec((H, H), lambda i, j: (0, 0), **const_kw),  # dense W
                pl.BlockSpec((1, H), lambda i, j: (0, 0), **const_kw),  # dense b
                pl.BlockSpec((1, H), lambda i, j: (0, 0), **const_kw),  # LN gamma
                pl.BlockSpec((1, H), lambda i, j: (0, 0), **const_kw),  # LN beta
                pl.BlockSpec((H, tn), lambda i, j: (0, j)),             # decoder W tile
                pl.BlockSpec((1, tn), lambda i, j: (0, j)),             # decoder b tile
            ],
            out_specs=pl.BlockSpec((tm, tn), lambda i, j: (i, j)),
            scratch_shapes=[pltpu.VMEM((tm, H), mm_dtype)],             # post-LN cache
        ),
        compiler_params=pltpu.CompilerParams(
            dimension_semantics=("parallel", "arbitrary"),
            vmem_limit_bytes=budget,
        ),
    )(x2d, w1, b1, gamma, beta, w2, b2)

    out2d = out2d[:N, :V]
    return out2d.reshape(B, S, V)


def init_params(key, hidden_size, num_visual_tokens):
    k1, k2, k3 = jax.random.split(key, 3)
    scale1 = 1.0 / math.sqrt(hidden_size)
    # Stored pre-transposed: (in_features, out_features)
    w1 = jax.random.uniform(k1, (hidden_size, hidden_size),
                            minval=-scale1, maxval=scale1, dtype=jnp.float32)
    b1 = jax.random.uniform(k2, (hidden_size,),
                            minval=-scale1, maxval=scale1, dtype=jnp.float32)
    gamma = jnp.ones((hidden_size,), jnp.float32)
    beta = jnp.zeros((hidden_size,), jnp.float32)
    w2 = jax.random.uniform(k3, (hidden_size, num_visual_tokens),
                            minval=-scale1, maxval=scale1, dtype=jnp.float32)
    b2 = jnp.zeros((num_visual_tokens,), jnp.float32)  # self.bias init zeros
    return {"w1": w1, "b1": b1, "gamma": gamma, "beta": beta,
            "w2": w2, "b2": b2}


def _reference(hidden_states, params, eps=1e-5):
    x = hidden_states.astype(jnp.float32)
    h = x @ params["w1"] + params["b1"]
    h = 0.5 * h * (1.0 + jax.lax.erf(h / math.sqrt(2.0)))
    mean = jnp.mean(h, axis=-1, keepdims=True)
    var = jnp.mean((h - mean) ** 2, axis=-1, keepdims=True)
    h = (h - mean) * jax.lax.rsqrt(var + eps)
    h = h * params["gamma"] + params["beta"]
    return h @ params["w2"] + params["b2"]


if __name__ == "__main__":
    key = jax.random.PRNGKey(0)

    # Test 1: basic shapes (f32; single V tile; >=2 row tiles auto-picked).
    B, S, H, V = 2, 8, 32, 64
    kx, kp = jax.random.split(key)
    hidden_states = jax.random.normal(kx, (B, S, H), dtype=jnp.float32)
    params = init_params(kp, H, V)
    out = jax.block_until_ready(head_for_mim(hidden_states, params, eps=1e-5))
    ref = _reference(hidden_states, params, eps=1e-5)
    assert out.shape == (B, S, V)
    assert jnp.allclose(out, ref, atol=1e-4, rtol=1e-4), "mismatch vs reference (test 1)"

    # Test 2: exercises row padding (N not a multiple of the tile), multiple
    # row tiles, multiple V tiles, and post-LN scratch reuse across V tiles.
    B2, S2, H2, V2 = 2, 7, 32, 256
    kx2, kp2 = jax.random.split(jax.random.PRNGKey(1))
    hs2 = jax.random.normal(kx2, (B2, S2, H2), dtype=jnp.float32)
    params2 = init_params(kp2, H2, V2)
    out2 = jax.block_until_ready(
        head_for_mim(hs2, params2, eps=1e-5, row_tile=8, v_tile=128))
    ref2 = _reference(hs2, params2, eps=1e-5)
    assert out2.shape == (B2, S2, V2)
    assert jnp.allclose(out2, ref2, atol=1e-4, rtol=1e-4), "mismatch vs reference (test 2)"

    # Test 3: bf16 model path (bf16 matmuls + bf16 post-LN scratch, f32 accum).
    hs3 = hidden_states.astype(jnp.bfloat16)
    out3 = jax.block_until_ready(head_for_mim(hs3, params, eps=1e-5))
    ref3 = _reference(hidden_states, params, eps=1e-5)
    assert out3.shape == (B, S, V)
    assert jnp.allclose(out3.astype(jnp.float32), ref3, atol=0.1, rtol=0.1), \
        "mismatch vs reference (test 3, bf16)"

    print("KERNEL_OK")
</pallas_src>

<mosaic_0001>
module attributes {stable_mosaic.version = 11 : i64} {
  func.func @k(%arg0: i32, %arg1: memref<8x128xf32, #tpu.memory_space<vmem>>, %arg2: memref<8x128xf32, #tpu.memory_space<vmem>>, %arg3: memref<8x128xf32, #tpu.memory_space<vmem>>) attributes {dimension_semantics = [#tpu.dimension_semantics<arbitrary>], iteration_bounds = array<i64: 2>, scalar_prefetch = 0 : i64, scratch_operands = 0 : i64, tpu.core_type = #tpu.core_type<tc>, window_params = [{pipeline_mode = #tpu.pipeline_mode<synchronous>, transform_indices = @transform_0, window_bounds = array<i64: 8, 128>}, {transform_indices = @transform_1, window_bounds = array<i64: 8, 128>}, {transform_indices = @transform_2, window_bounds = array<i64: 8, 128>}]} {
    %c0 = arith.constant 0 : index
    %c0_0 = arith.constant 0 : index
    %0 = vector.load %arg2[%c0, %c0_0] : memref<8x128xf32, #tpu.memory_space<vmem>>, vector<8x128xf32>
    %c0_1 = arith.constant 0 : index
    %c0_2 = arith.constant 0 : index
    %1 = vector.load %arg1[%c0_1, %c0_2] : memref<8x128xf32, #tpu.memory_space<vmem>>, vector<8x128xf32>
    %2 = arith.addf %0, %1 : vector<8x128xf32>
    %c0_3 = arith.constant 0 : index
    %c0_4 = arith.constant 0 : index
    %3 = vector.load %arg3[%c0_3, %c0_4] : memref<8x128xf32, #tpu.memory_space<vmem>>, vector<8x128xf32>
    tpu.vector_store %arg3[%c0_3, %c0_4], %2 {strides = array<i32>} : memref<8x128xf32, #tpu.memory_space<vmem>>, vector<8x128xf32>,
    return
  }
  func.func @transform_0(%arg0: i32) -> (i32, i32) {
    %c0_i32 = arith.constant 0 : i32
    %c0_i32_0 = arith.constant 0 : i32
    %c0_i32_1 = arith.constant 0 : i32
    return %c0_i32, %c0_i32_0 : i32, i32
  }
  func.func @transform_1(%arg0: i32) -> (i32, i32) {
    %c0_i32 = arith.constant 0 : i32
    %c0_i32_0 = arith.constant 0 : i32
    return %arg0, %c0_i32 : i32, i32
  }
  func.func @transform_2(%arg0: i32) -> (i32, i32) {
    %c0_i32 = arith.constant 0 : i32
    %c0_i32_0 = arith.constant 0 : i32
    return %arg0, %c0_i32 : i32, i32
  }
}

module attributes {stable_mosaic.version = 11 : i64} {
  func.func @_mim_head_kernel(%arg0: i32, %arg1: i32, %arg2: memref<8x32xf32, #tpu.memory_space<vmem>>, %arg3: memref<32x32xf32, #tpu.memory_space<vmem>>, %arg4: memref<1x32xf32, #tpu.memory_space<vmem>>, %arg5: memref<1x32xf32, #tpu.memory_space<vmem>>, %arg6: memref<1x32xf32, #tpu.memory_space<vmem>>, %arg7: memref<32x64xf32, #tpu.memory_space<vmem>>, %arg8: memref<1x64xf32, #tpu.memory_space<vmem>>, %arg9: memref<8x64xf32, #tpu.memory_space<vmem>>, %arg10: memref<8x32xf32, #tpu.memory_space<vmem>>) attributes {dimension_semantics = [#tpu.dimension_semantics<parallel>, #tpu.dimension_semantics<arbitrary>], iteration_bounds = array<i64: 2, 1>, scalar_prefetch = 0 : i64, scratch_operands = 1 : i64, tpu.core_type = #tpu.core_type<tc>, window_params = [{transform_indices = @transform_0, window_bounds = array<i64: 8, 32>}, {pipeline_mode = #tpu.pipeline_mode<synchronous>, transform_indices = @transform_1, window_bounds = array<i64: 32, 32>}, {pipeline_mode = #tpu.pipeline_mode<synchronous>, transform_indices = @transform_2, window_bounds = array<i64: 1, 32>}, {pipeline_mode = #tpu.pipeline_mode<synchronous>, transform_indices = @transform_3, window_bounds = array<i64: 1, 32>}, {pipeline_mode = #tpu.pipeline_mode<synchronous>, transform_indices = @transform_4, window_bounds = array<i64: 1, 32>}, {transform_indices = @transform_5, window_bounds = array<i64: 32, 64>}, {transform_indices = @transform_6, window_bounds = array<i64: 1, 64>}, {transform_indices = @transform_7, window_bounds = array<i64: 8, 64>}]} {
    %c0_i32 = arith.constant 0 : i32
    %0 = arith.cmpi eq, %arg1, %c0_i32 : i32
    %1 = arith.extui %0 : i1 to i32
    %c0_i32_0 = arith.constant 0 : i32
    %2 = arith.cmpi ne, %1, %c0_i32_0 : i32
    scf.if %2 {
      %c0_8 = arith.constant 0 : index
      %c0_9 = arith.constant 0 : index
      %10 = vector.load %arg2[%c0_8, %c0_9] : memref<8x32xf32, #tpu.memory_space<vmem>>, vector<8x32xf32>
      %c0_10 = arith.constant 0 : index
      %c0_11 = arith.constant 0 : index
      %11 = vector.load %arg3[%c0_10, %c0_11] : memref<32x32xf32, #tpu.memory_space<vmem>>, vector<32x32xf32>
      %cst_12 = arith.constant dense<0.000000e+00> : vector<8x32xf32>
      %12 = tpu.matmul %10, %11, %cst_12 {dimension_numbers = #tpu.dot_dimension_numbers<[1], [0], [0], [1], [0, 0, 1, 1], [], []>} : vector<8x32xf32>, vector<32x32xf32>, vector<8x32xf32> -> vector<8x32xf32>
      %c0_13 = arith.constant 0 : index
      %c0_14 = arith.constant 0 : index
      %13 = vector.load %arg4[%c0_13, %c0_14] : memref<1x32xf32, #tpu.memory_space<vmem>>, vector<1x32xf32>
      %14 = vector.broadcast %13 : vector<1x32xf32> to vector<8x32xf32>
      %15 = arith.addf %12, %14 : vector<8x32xf32>
      %cst_15 = arith.constant 5.000000e-01 : f32
      %16 = vector.broadcast %cst_15 : f32 to vector<8x32xf32>
      %17 = arith.mulf %16, %15 : vector<8x32xf32>
      %cst_16 = arith.constant 0.707106769 : f32
      %18 = vector.broadcast %cst_16 : f32 to vector<8x32xf32>
      %19 = arith.mulf %15, %18 : vector<8x32xf32>
      %20 = math.erf %19 : vector<8x32xf32>
      %cst_17 = arith.constant 1.000000e+00 : f32
      %21 = vector.broadcast %cst_17 : f32 to vector<8x32xf32>
      %22 = arith.addf %21, %20 : vector<8x32xf32>
      %23 = arith.mulf %17, %22 : vector<8x32xf32>
      %cst_18 = arith.constant dense<0.000000e+00> : vector<8xf32>
      %24 = vector.multi_reduction <add>, %23, %cst_18 [1] : vector<8x32xf32> to vector<8xf32>
      %25 = vector.shape_cast %24 : vector<8xf32> to vector<8x1xf32>
      %cst_19 = arith.constant 3.200000e+01 : f32
      %26 = vector.broadcast %cst_19 : f32 to vector<8x1xf32>
      %27 = arith.divf %25, %26 : vector<8x1xf32>
      %28 = vector.broadcast %27 : vector<8x1xf32> to vector<8x32xf32>
      %29 = arith.subf %23, %28 : vector<8x32xf32>
      %30 = arith.mulf %29, %29 : vector<8x32xf32>
      %cst_20 = arith.constant dense<0.000000e+00> : vector<8xf32>
      %31 = vector.multi_reduction <add>, %30, %cst_20 [1] : vector<8x32xf32> to vector<8xf32>
      %32 = vector.shape_cast %31 : vector<8xf32> to vector<8x1xf32>
      %cst_21 = arith.constant 3.200000e+01 : f32
      %33 = vector.broadcast %cst_21 : f32 to vector<8x1xf32>
      %34 = arith.divf %32, %33 : vector<8x1xf32>
      %cst_22 = arith.constant 9.99999974E-6 : f32
      %35 = vector.broadcast %cst_22 : f32 to vector<8x1xf32>
      %36 = arith.addf %34, %35 : vector<8x1xf32>
      %37 = math.rsqrt %36 : vector<8x1xf32>
      %38 = vector.broadcast %37 : vector<8x1xf32> to vector<8x32xf32>
      %39 = arith.mulf %29, %38 : vector<8x32xf32>
      %c0_23 = arith.constant 0 : index
      %c0_24 = arith.constant 0 : index
      %40 = vector.load %arg5[%c0_23, %c0_24] : memref<1x32xf32, #tpu.memory_space<vmem>>, vector<1x32xf32>
      %41 = vector.broadcast %40 : vector<1x32xf32> to vector<8x32xf32>
      %42 = arith.mulf %39, %41 : vector<8x32xf32>
      %c0_25 = arith.constant 0 : index
      %c0_26 = arith.constant 0 : index
      %43 = vector.load %arg6[%c0_25, %c0_26] : memref<1x32xf32, #tpu.memory_space<vmem>>, vector<1x32xf32>
      %44 = vector.broadcast %43 : vector<1x32xf32> to vector<8x32xf32>
      %45 = arith.addf %42, %44 : vector<8x32xf32>
      %c0_27 = arith.constant 0 : index
      %c0_28 = arith.constant 0 : index
      %46 = vector.load %arg10[%c0_27, %c0_28] : memref<8x32xf32, #tpu.memory_space<vmem>>, vector<8x32xf32>
      tpu.vector_store %arg10[%c0_27, %c0_28], %45 {strides = array<i32>} : memref<8x32xf32, #tpu.memory_space<vmem>>, vector<8x32xf32>,
    } else {
    }
    %c0 = arith.constant 0 : index
    %c0_1 = arith.constant 0 : index
    %3 = vector.load %arg10[%c0, %c0_1] : memref<8x32xf32, #tpu.memory_space<vmem>>, vector<8x32xf32>
    %c0_2 = arith.constant 0 : index
    %c0_3 = arith.constant 0 : index
    %4 = vector.load %arg7[%c0_2, %c0_3] : memref<32x64xf32, #tpu.memory_space<vmem>>, vector<32x64xf32>
    %cst = arith.constant dense<0.000000e+00> : vector<8x64xf32>
    %5 = tpu.matmul %3, %4, %cst {dimension_numbers = #tpu.dot_dimension_numbers<[1], [0], [0], [1], [0, 0, 1, 1], [], []>} : vector<8x32xf32>, vector<32x64xf32>, vector<8x64xf32> -> vector<8x64xf32>
    %c0_4 = arith.constant 0 : index
    %c0_5 = arith.constant 0 : index
    %6 = vector.load %arg8[%c0_4, %c0_5] : memref<1x64xf32, #tpu.memory_space<vmem>>, vector<1x64xf32>
    %7 = vector.broadcast %6 : vector<1x64xf32> to vector<8x64xf32>
    %8 = arith.addf %5, %7 : vector<8x64xf32>
    %c0_6 = arith.constant 0 : index
    %c0_7 = arith.constant 0 : index
    %9 = vector.load %arg9[%c0_6, %c0_7] : memref<8x64xf32, #tpu.memory_space<vmem>>, vector<8x64xf32>
    tpu.vector_store %arg9[%c0_6, %c0_7], %8 {strides = array<i32>} : memref<8x64xf32, #tpu.memory_space<vmem>>, vector<8x64xf32>,
    return
  }
  func.func @transform_0(%arg0: i32, %arg1: i32) -> (i32, i32) {
    %c0_i32 = arith.constant 0 : i32
    %c0_i32_0 = arith.constant 0 : i32
    return %arg0, %c0_i32 : i32, i32
  }
  func.func @transform_1(%arg0: i32, %arg1: i32) -> (i32, i32) {
    %c0_i32 = arith.constant 0 : i32
    %c0_i32_0 = arith.constant 0 : i32
    %c0_i32_1 = arith.constant 0 : i32
    return %c0_i32, %c0_i32_0 : i32, i32
  }
  func.func @transform_2(%arg0: i32, %arg1: i32) -> (i32, i32) {
    %c0_i32 = arith.constant 0 : i32
    %c0_i32_0 = arith.constant 0 : i32
    %c0_i32_1 = arith.constant 0 : i32
    return %c0_i32, %c0_i32_0 : i32, i32
  }
  func.func @transform_3(%arg0: i32, %arg1: i32) -> (i32, i32) {
    %c0_i32 = arith.constant 0 : i32
    %c0_i32_0 = arith.constant 0 : i32
    %c0_i32_1 = arith.constant 0 : i32
    return %c0_i32, %c0_i32_0 : i32, i32
  }
  func.func @transform_4(%arg0: i32, %arg1: i32) -> (i32, i32) {
    %c0_i32 = arith.constant 0 : i32
    %c0_i32_0 = arith.constant 0 : i32
    %c0_i32_1 = arith.constant 0 : i32
    return %c0_i32, %c0_i32_0 : i32, i32
  }
  func.func @transform_5(%arg0: i32, %arg1: i32) -> (i32, i32) {
    %c0_i32 = arith.constant 0 : i32
    %c0_i32_0 = arith.constant 0 : i32
    return %c0_i32, %arg1 : i32, i32
  }
  func.func @transform_6(%arg0: i32, %arg1: i32) -> (i32, i32) {
    %c0_i32 = arith.constant 0 : i32
    %c0_i32_0 = arith.constant 0 : i32
    return %c0_i32, %arg1 : i32, i32
  }
  func.func @transform_7(%arg0: i32, %arg1: i32) -> (i32, i32) {
    %c0_i32 = arith.constant 0 : i32
    return %arg0, %arg1 : i32, i32
  }
}

</mosaic_0001>

<bundles_post_ra>
// kernel: tpu_custom_call.1
= control target key start
LH: loop header
LB: loop body
LE: loop exit
PB: predicated region body
PF: predicated region fallthrough
CT: control target
= control target key end

     0   :  { %7 = vsyncpa [#allocation3], 0  ;;  %s692_s0 = inlined_call_operand.hbm [shape: f32[8,128], index: 0, kind: input, shape index: {}]   ;;  %s693_s1 = inlined_call_operand.hbm [shape: f32[16,128], index: 1, kind: input, shape index: {}]   ;;  %s694_s2 = inlined_call_operand.hbm [shape: f32[16,128], index: 2, kind: output, shape index: {}]  }
   0x1   :  { %8 = vsyncpa [#allocation6], 0 }
   0x2   :  { %10 = vsyncpa [#allocation6 + $0x1], 0 }
   0x3   :  { %11 = vsyncpa [#allocation4], 0 }
   0x4   :  { %13 = vsyncpa [#allocation4 + $0x1], 0  ;;  %s491_s9 = smov 0   ;;  %s493_s10 = smov 0  }
   0x5   :  { %s495_s11 = smov 0   ;;  %s497_s12 = smov 0  }
   0x6 LB: > { %s512_s13 = sadd.s32 4294967295, %s471_s12   ;;  %s272_s14 = sadd.s32 4294967294, %s471_s12   ;;  %s471_s12 = sphi %s497_s12, %s718_s12   ;;  %s467_s11 = sphi %s495_s11, %s717_s11   ;;  %s463_s10 = sphi %s493_s10, %s716_s10   ;;  %s459_s9 = sphi %s491_s9, %s715_s9  }
   0x7   : > { %p60_p0 = scmp.ne.s32.totalorder %s463_s10, %s459_s9  ;;  %p695_p1 = scmp.eq.s32.totalorder %s512_s13, 0 }
   0x8   : > { %p90_p3 = scmp.eq.s32.totalorder %s272_s14, 1  ;;  %p273_p5 = scmp.ge.s32.totalorder %s471_s12, 1 }
   0x9   : > { %p521_p4 = por %p695_p1, %p60_p0  ;;  %p97_p7 = scmp.lt.s32.totalorder %s471_s12, 3 }
   0xa   : > { %p526_p6 = por %p90_p3, %p60_p0  ;;  %s473_s18 = smov [#allocation2]  }
   0xb   : > { %s698_s15 = scalar_select %p521_p4, 1, 0 }
   0xc   : > { %s699_s16 = scalar_select %p526_p6, 1, 0 }
   0xd   : > { %p531_p8 = pnand %p273_p5, %p97_p7  ;;  %s110_s19 = sshll.u32 %s473_s18, 4  ;;  %s111_s19 = int_to_ptr.vmem [resolvable:$true] %s110_s19 }
   0xe   : > { %s539_s20 = sadd.s32 1, %s471_s12   ;;  %s47_s24 = sadd.s32 1, %s467_s11 }
   0xf   : > { %s700_s17 = scalar_select %p531_p8, 1, 0 }
  0x10   : > { %p294_p10 = pneg %p531_p8  ;;  %s44_s22 = ssub.s32 %s471_s12, %s539_s20 }
  0x11   : > { %p549_p12 = scmp.eq.s32.totalorder %s44_s22, 0  ;;  %s343_s27 = scalar_lea.hbm %s692_s0, 128 }
  0x12   : > { %p543_p11 = pnand %p294_p10, %p695_p1  ;;  %p344_p0 = scmp.ne.s32.totalorder %s692_s0, %s343_s27 }
  0x13   : > { %s702_s23 = scalar_select %p549_p12, 1, 0 }
  0x14   : > { %p345_p3 = pneg %p543_p11  ;;  %p350_p10 = scmp.lt.u32.totalorder %s343_s27, %s692_s0 }
  0x16   : > { %p346_p5 = pnand %p345_p3, %p344_p0 }
  0x18   : > { %p347_p7 = pneg %p346_p5 }
  0x1a   : > { %p352_p9 = pnand %p350_p10, %p347_p7 }
  0x1c   : > { %355 = shalt.err (!%p352_p9)
}
  0x1d   : > { %s356_s4 = scalar_lea.vmem %s111_s19, 128  ;;  %p364_p6 = scmp.lt.s32.totalorder %s111_s19, %s111_s19 }
  0x1e   : > { %p357_p1 = scmp.ne.s32.totalorder %s111_s19, %s356_s4  ;;  %p365_p4 = scmp.lt.s32.totalorder %s356_s4, %s356_s4 }
  0x20   : > { %p359_p2 = pnand %p357_p1, %p345_p3  ;;  %p366_p8 = por %p365_p4, %p364_p6 }
  0x22   : > { %p360_p13 = pneg %p359_p2 }
  0x24   : > { %p367_p12 = pnand %p366_p8, %p360_p13 }
  0x26   : > { %370 = shalt.err (!%p367_p12)
}
  0x27   : > { %297 = dma.hbm_to_vmem [thread:$0]  (!%p543_p11), %s692_s0, 128, %s111_s19, [#allocation3]  }
  0x28   : > { %p703_p1 = scmp.ne.s32.totalorder %s702_s23, 0  ;;  %p55_p2 = scmp.eq.s32.totalorder %s471_s12, 0 }
  0x29   : > { %p704_p4 = scmp.ne.s32.totalorder %s467_s11, %s463_s10  ;;  %p705_p6 = scmp.eq.s32.totalorder %s512_s13, 1 }
  0x2a   : > { %s575_s7 = scalar_select %p703_p1, %s467_s11, %s47_s24  }
  0x2b   : > { %p583_p8 = por %p705_p6, %p704_p4  ;;  %p307_p9 = scmp.lt.s32.totalorder %s471_s12, 2 }
  0x2c   : > { %s121_s14 = sand.u32 1, %s467_s11   ;;  %p707_p12 = pmov %p704_p4 }
  0x2d   : > { %s276_s18 = sshll.u32 %s121_s14, 3  ;;  %s277_s21 = sshll.u32 %s471_s12, 7 }
  0x2e   : > { %p56_p13 = por %p55_p2, %p707_p12  ;;  %s596_s19 = scalar_lea.hbm %s693_s1, %s277_s21 }
  0x2f   : > { %s125_s23 = scalar_lea.vmem [#allocation5], %s276_s18  ;;  %s122_s27 = scalar_lea.sflag [#allocation6], %s121_s14 }
  0x30   : > { %s132_s24 = sshll.u32 %s125_s23, 4  ;;  %p598_p11 = pnand %p307_p9, %p56_p13  ;;  %s602_s24 = int_to_ptr.vmem [resolvable:$true] %s132_s24 }
  0x31   : > { %s371_s28 = scalar_lea.hbm %s596_s19, 128  ;;  %s376_s3 = scalar_lea.hbm %s693_s1, 256 }
  0x32   : > { %p372_p0 = scmp.ne.s32.totalorder %s596_s19, %s371_s28  ;;  %p373_p3 = pneg %p598_p11 }
  0x33   : > { %p377_p10 = scmp.lt.u32.totalorder %s596_s19, %s693_s1  ;;  %p378_p1 = scmp.lt.u32.totalorder %s376_s3, %s371_s28 }
  0x34   : > { %p374_p5 = pnand %p373_p3, %p372_p0  ;;  %p380_p4 = scmp.lt.u32.totalorder %s371_s28, %s596_s19 }
  0x35   : > { %p379_p2 = por %p378_p1, %p377_p10 }
  0x36   : > { %p375_p7 = pneg %p374_p5 }
  0x37   : > { %p381_p6 = por %p380_p4, %p379_p2 }
  0x39   : > { %p382_p9 = pnand %p381_p6, %p375_p7 }
  0x3b   : > { %385 = shalt.err (!%p382_p9)
}
  0x3c   : > { %s386_s6 = scalar_lea.vmem %s602_s24, 128  ;;  %s474_s14 = smov [#allocation5]  }
  0x3d   : > { %p387_p12 = scmp.ne.s32.totalorder %s602_s24, %s386_s6  ;;  %s391_s18 = sshll.u32 %s474_s14, 4  ;;  %s392_s18 = int_to_ptr.vmem [resolvable:$false] %s391_s18 }
  0x3e   : > { %s393_s21 = scalar_lea.vmem %s392_s18, 256  ;;  %p394_p5 = scmp.lt.s32.totalorder %s602_s24, %s392_s18 }
  0x3f   : > { %p389_p13 = pnand %p387_p12, %p373_p3  ;;  %p395_p10 = scmp.lt.s32.totalorder %s393_s21, %s386_s6 }
  0x41   : > { %p390_p0 = pneg %p389_p13  ;;  %p396_p1 = por %p395_p10, %p394_p5 }
  0x43   : > { %p397_p2 = pnand %p396_p1, %p390_p0 }
  0x45   : > { %400 = shalt.err (!%p397_p2)
}
  0x46   : > { %301 = dma.hbm_to_vmem [thread:$0]  (!%p598_p11), %s596_s19, 128, %s602_s24, %s122_s27  }
  0x47   : > { %p709_p7 = scmp.ne.s32.totalorder %s700_s17, 0 }
  0x48   : > { %p710_p3 = scmp.eq.s32.totalorder (!%p709_p7), %s512_s13, 0 }
  0x49   : > { %141 = sbr.rel (%p709_p7) target bundleno = 110 (0x6e), region = 28 }
  0x50   : > { %446 = dma.done.wait (%p710_p3), [#allocation3], 128   ;;  %p711_p4 = pmov %p710_p3 }
  0x51   : > { %s636_s22 = sand.u32 1, %s463_s10   ;;  %p712_p6 = scmp.ne.s32.totalorder %s698_s15, 0 }
  0x52   : > { %448 = vsyncadd (%p711_p4), [#allocation3], 4294967168  ;;  %s280_s25 = sshll.u32 %s636_s22, 3  ;;  %s148_s23 = scalar_lea.sflag [#allocation6], %s636_s22 }
  0x53   : > { %s151_s26 = scalar_lea.vmem [#allocation5], %s280_s25 }
  0x54   : > { %450 = dma.done.wait (%p712_p6), %s148_s23, 128  }
  0x55   : > { %452 = vsyncadd (%p712_p6), %s148_s23, 4294967168  ;;  %s171_s17 = scalar_lea.vmem [#allocation7], %s280_s25  ;;  %s283_s24 = sshll.u32 %s512_s13, 7  ;;  %v172_v0 = vld [vmem:[%s151_s26] sm:$0xff]  ;;  %v173_v1 = vld [vmem:[#allocation2] sm:$0xff] }
  0x56   : > { %s190_s19 = sshll.u32 %s171_s17, 4  ;;  %v174_v2 = vadd.f32 %v173_v1, %v172_v0  ;;  %s650_s29 = scalar_lea.hbm %s694_s2, %s283_s24  ;;  %s645_s19 = int_to_ptr.vmem [resolvable:$true] %s190_s19 }
  0x57   : > { %s177_s15 = scalar_lea.sflag [#allocation4], %s636_s22  ;;  %s401_s30 = scalar_lea.vmem %s645_s19, 128 }
  0x58   : > { %175 = vst [vmem:[%s171_s17] sm:$0xff] %v174_v2  ;;  %p402_p11 = scmp.ne.s32.totalorder %s645_s19, %s401_s30  ;;  %s475_s13 = smov [#allocation7]  }
  0x59   : > { %s405_s3 = sshll.u32 %s475_s13, 4  ;;  %s406_s3 = int_to_ptr.vmem [resolvable:$false] %s405_s3 }
  0x5a   : > { %p403_p9 = pnand %p402_p11, %p583_p8  ;;  %s407_s4 = scalar_lea.vmem %s406_s3, 256 }
  0x5b   : > { %p408_p13 = scmp.lt.s32.totalorder %s645_s19, %s406_s3  ;;  %p409_p0 = scmp.lt.s32.totalorder %s407_s4, %s401_s30 }
  0x5c   : > { %p404_p12 = pneg %p403_p9 }
  0x5d   : > { %p410_p5 = por %p409_p0, %p408_p13 }
  0x5f   : > { %p411_p10 = pnand %p410_p5, %p404_p12 }
  0x61   : > { %414 = shalt.err (!%p411_p10)
}
  0x62   : > { %s415_s5 = scalar_lea.hbm %s650_s29, 128  ;;  %s419_s18 = scalar_lea.hbm %s694_s2, 256 }
  0x63   : > { %p416_p1 = scmp.ne.s32.totalorder %s650_s29, %s415_s5  ;;  %p420_p3 = scmp.lt.u32.totalorder %s650_s29, %s694_s2 }
  0x64   : > { %p421_p4 = scmp.lt.u32.totalorder %s419_s18, %s415_s5  ;;  %p423_p11 = scmp.lt.u32.totalorder %s415_s5, %s650_s29 }
  0x65   : > { %p417_p2 = pnand %p416_p1, %p583_p8 }
  0x66   : > { %p422_p6 = por %p421_p4, %p420_p3 }
  0x67   : > { %p418_p7 = pneg %p417_p2 }
  0x68   : > { %p424_p9 = por %p423_p11, %p422_p6 }
  0x6a   : > { %p425_p12 = pnand %p424_p9, %p418_p7 }
  0x6c   : > { %428 = shalt.err (!%p425_p12)
}
  0x6d   : > { %292 = dma.vmem_to_hbm [thread:$0]  (%p583_p8), %s645_s19, 128, %s650_s29, %s177_s15  }
  0x6e PF: > { %s202_s25 = sand.u32 1, %s459_s9   ;;  %p713_p13 = scmp.ne.s32.totalorder %s699_s16, 0 }
  0x6f   : > { %p714_p0 = scmp.ge.s32.totalorder %s471_s12, 2  ;;  %s203_s23 = scalar_lea.sflag [#allocation4], %s202_s25 }
  0x71   : > { %p303_p5 = pnand %p714_p0, %p713_p13 }
  0x73   : > { %454 = dma.done.wait (!%p303_p5), %s203_s23, 128  }
  0x74   : > { %456 = vsyncadd (!%p303_p5), %s203_s23, 4294967168  ;;  %p16_p10 = scmp.ge.s32.totalorder %s539_s20, 4   ;;  %s715_s9 = smov %s463_s10 }
  0x75   : > { %s716_s10 = smov %s467_s11  ;;  %s717_s11 = smov %s575_s7 }
  0x76   : > { %s718_s12 = smov %s539_s20  ;;  %18 = sbr.rel (!%p16_p10) target bundleno = 6 (0x6), region = 78 }
  0x7d   :  { %208 = vsyncpa [#allocation3], 1 }
  0x7e   :  { %210 = vsyncpa [#allocation3 + $0x1], 1 }
  0x7f   :  { %211 = vsyncpa [#allocation6], 1 }
  0x80   :  { %213 = vsyncpa [#allocation6 + $0x1], 1 }
  0x81   :  { %214 = vsyncpa [#allocation4], 1 }
  0x82   :  { %216 = vsyncpa [#allocation4 + $0x1], 1 }

// kernel: tpu_custom_call.1
= control target key start
LH: loop header
LB: loop body
LE: loop exit
PB: predicated region body
PF: predicated region fallthrough
CT: control target
= control target key end

     0   :  { %12 = vsyncpa [#allocation4], 0  ;;  %s1353_s0 = inlined_call_operand.hbm [shape: f32[16,32], index: 0, kind: input, shape index: {}]   ;;  %s1354_s1 = inlined_call_operand.hbm [shape: f32[32,32], index: 1, kind: input, shape index: {}]   ;;  %s1355_s2 = inlined_call_operand.vmem [shape: f32[1,32], index: 2, kind: input, shape index: {}]   ;;  %s1356_s3 = inlined_call_operand.vmem [shape: f32[1,32], index: 3, kind: input, shape index: {}]   ;;  %s1357_s4 = inlined_call_operand.vmem [shape: f32[1,32], index: 4, kind: input, shape index: {}]   ;;  %s1358_s5 = inlined_call_operand.hbm [shape: f32[32,64], index: 5, kind: input, shape index: {}]   ;;  %s1359_s6 = inlined_call_operand.vmem [shape: f32[1,64], index: 6, kind: input, shape index: {}]   ;;  %s1360_s7 = inlined_call_operand.hbm [shape: f32[16,64], index: 7, kind: output, shape index: {}]  }
   0x1   :  { %14 = vsyncpa [#allocation4 + $0x1], 0 }
   0x2   :  { %15 = vsyncpa [#allocation7], 0 }
   0x3   :  { %16 = vsyncpa [#allocation5], 0 }
   0x4   :  { %18 = vsyncpa [#allocation5 + $0x1], 0  ;;  %s1082_s24 = smov 0   ;;  %s1084_s25 = smov 0  }
   0x5   :  { %s1086_s26 = smov 0   ;;  %s1088_s27 = smov 0  }
   0x6   :  { %s1090_s28 = smov 0   ;;  %s1092_s29 = smov 0  }
   0x7 LB: > { %1367 = sst [smem:[#allocation13_spill]] %s1011_s24  ;;  %s699_s30 = sadd.s32 4294967295, %s1031_s29   ;;  %s1031_s29 = sphi %s1092_s29, %s24_s29   ;;  %s1027_s28 = sphi %s1090_s28, %s1388_s28   ;;  %s1023_s27 = sphi %s1088_s27, %s1387_s27   ;;  %s1019_s26 = sphi %s1086_s26, %s1386_s26   ;;  %s1015_s25 = sphi %s1084_s25, %s1385_s25   ;;  %s1011_s24 = sphi %s1082_s24, %s1384_s24  }
   0x8   : > { %s700_s8 = sadd.s32 4294967294, %s1031_s29   ;;  %p56_p0 = scmp.ne.s32.totalorder %s1015_s25, %s1011_s24 }
   0x9   : > { %p1116_p1 = scmp.eq.s32.totalorder %s699_s30, 0  ;;  %p1120_p2 = scmp.eq.s32.totalorder %s699_s30, 1 }
   0xa   : > { %p224_p3 = scmp.eq.s32.totalorder %s700_s8, 1  ;;  %p701_p5 = scmp.ge.s32.totalorder %s1031_s29, 1 }
   0xb   : > { %s1368_s9 = scalar_select %p1116_p1, 1, 0 }
   0xc   : > { %p1126_p4 = por %p1116_p1, %p56_p0  ;;  %p1131_p6 = por %p224_p3, %p56_p0 }
   0xd   : > { %p231_p7 = scmp.lt.s32.totalorder %s1031_s29, 3  ;;  %s1033_s14 = smov [#allocation6]  }
   0xe   : > { %s1370_s11 = scalar_select %p1126_p4, 1, 0 }
   0xf   : > { %s1371_s12 = scalar_select %p1131_p6, 1, 0 }
  0x10   : > { %p1136_p8 = pnand %p701_p5, %p231_p7  ;;  %s243_s15 = sshll.u32 %s1033_s14, 4  ;;  %s1140_s15 = int_to_ptr.vmem [resolvable:$true] %s243_s15 }
  0x11   : > { %1372 = sst [smem:[#allocation14_spill]] %s1371_s12  ;;  %s1034_s17 = smov [#allocation8]  }
  0x12   : > { %p779_p9 = pneg %p1136_p8  ;;  %s267_s18 = sshll.u32 %s1034_s17, 4  ;;  %s1151_s18 = int_to_ptr.vmem [resolvable:$true] %s267_s18 }
  0x13   : > { %s859_s21 = scalar_lea.hbm %s1354_s1, 512 }
  0x14   : > { %p1147_p11 = pnand %p779_p9, %p1116_p1  ;;  %p860_p12 = scmp.ne.s32.totalorder %s1354_s1, %s859_s21 }
  0x15   : > { %p866_p5 = scmp.lt.u32.totalorder %s859_s21, %s1354_s1 }
  0x16   : > { %p861_p13 = pneg %p1147_p11 }
  0x18   : > { %p862_p0 = pnand %p861_p13, %p860_p12 }
  0x1a   : > { %p863_p3 = pneg %p862_p0 }
  0x1c   : > { %p868_p7 = pnand %p866_p5, %p863_p3 }
  0x1e   : > { %871 = shalt.err (!%p868_p7)
}
  0x1f   : > { %s872_s14 = scalar_lea.vmem %s1140_s15, 512  ;;  %p880_p1 = scmp.lt.s32.totalorder %s1140_s15, %s1140_s15 }
  0x20   : > { %p873_p9 = scmp.ne.s32.totalorder %s1140_s15, %s872_s14  ;;  %p881_p12 = scmp.lt.s32.totalorder %s872_s14, %s872_s14 }
  0x22   : > { %p875_p10 = pnand %p873_p9, %p861_p13  ;;  %p882_p0 = por %p881_p12, %p880_p1 }
  0x24   : > { %p876_p6 = pneg %p875_p10 }
  0x26   : > { %p883_p4 = pnand %p882_p0, %p876_p6 }
  0x28   : > { %886 = shalt.err (!%p883_p4)
}
  0x29   : > { %s1035_s17 = smov 128   ;;  %s1036_s19 = smov 8  }
  0x2a   : > { %782 = dma.hbm_to_vmem [thread:$0]  (!%p1147_p11), %s1354_s1, 512, %s1140_s15, [#allocation7], %s1035_s17, %s1035_s17, %s1036_s19  }
  0x2b   : > { %s887_s30 = scalar_lea.hbm %s1358_s5, 512 }
  0x2c   : > { %p888_p1 = scmp.ne.s32.totalorder %s1358_s5, %s887_s30  ;;  %p894_p10 = scmp.lt.u32.totalorder %s887_s30, %s1358_s5 }
  0x2e   : > { %p890_p4 = pnand %p888_p1, %p861_p13 }
  0x30   : > { %p891_p6 = pneg %p890_p4 }
  0x32   : > { %p896_p3 = pnand %p894_p10, %p891_p6 }
  0x34   : > { %899 = shalt.err (!%p896_p3)
}
  0x35   : > { %s900_s15 = scalar_lea.vmem %s1151_s18, 512  ;;  %p908_p12 = scmp.lt.s32.totalorder %s1151_s18, %s1151_s18 }
  0x36   : > { %p901_p5 = scmp.ne.s32.totalorder %s1151_s18, %s900_s15  ;;  %p909_p0 = scmp.lt.s32.totalorder %s900_s15, %s900_s15 }
  0x38   : > { %p903_p7 = pnand %p901_p5, %p861_p13  ;;  %p910_p1 = por %p909_p0, %p908_p12 }
  0x3a   : > { %p904_p9 = pneg %p903_p7 }
  0x3c   : > { %p911_p4 = pnand %p910_p1, %p904_p9 }
  0x3e   : > { %914 = shalt.err (!%p911_p4)
}
  0x3f   : > { %785 = dma.hbm_to_vmem [thread:$0]  (!%p1147_p11), %s1358_s5, 512, %s1151_s18, [#allocation7], %s1035_s17, %s1035_s17, %s1036_s19  }
  0x40   : > { %s36_s20 = sadd.s32 1, %s1027_s28  ;;  %s43_s21 = sadd.s32 1, %s1019_s26 }
  0x41   : > { %p38_p13 = scmp.ge.s32.totalorder %s36_s20, 2  ;;  %p50_p6 = scmp.ne.s32.totalorder %s1019_s26, %s1015_s25 }
  0x42   : > { %p51_p10 = scmp.eq.s32.totalorder %s1031_s29, 0  ;;  %p796_p3 = scmp.lt.s32.totalorder %s1031_s29, 2 }
  0x43   : > { %s1390_s20 = smov (%p38_p13, %s36_s20), 0  ;;  %p1215_p7 = por %p1120_p2, %p50_p6 }
  0x44   : > { %p52_p5 = por %p51_p10, %p50_p6  ;;  %s40_s22 = ssub.s32 %s1027_s28, %s1390_s20 }
  0x45   : > { %s1375_s16 = scalar_select %p1215_p7, 1, 0 }
  0x46   : > { %s287_s23 = sand.u32 1, %s1019_s26   ;;  %p41_p9 = scmp.eq.s32.totalorder %s40_s22, 0 }
  0x47   : > { %s706_s18 = sshll.u32 %s287_s23, 3  ;;  %s707_s17 = sshll.u32 %s1027_s28, 7 }
  0x48   : > { %s1224_s19 = scalar_select %p41_p9, %s1019_s26, %s43_s21  }
  0x49   : > { %s1229_s14 = scalar_lea.hbm %s1353_s0, %s707_s17  ;;  %s291_s10 = scalar_lea.vmem [#allocation3], %s706_s18 }
  0x4a   : > { %s298_s15 = sshll.u32 %s291_s10, 4  ;;  %p1233_p2 = pnand %p796_p3, %p52_p5  ;;  %s1237_s15 = int_to_ptr.vmem [resolvable:$true] %s298_s15 }
  0x4b   : > { %s288_s12 = scalar_lea.sflag [#allocation4], %s287_s23  ;;  %s915_s21 = scalar_lea.hbm %s1229_s14, 128 }
  0x4c   : > { %p916_p11 = scmp.ne.s32.totalorder %s1229_s14, %s915_s21  ;;  %p917_p12 = pneg %p1233_p2 }
  0x4d   : > { %s920_s17 = scalar_lea.hbm %s1353_s0, 256  ;;  %p921_p4 = scmp.lt.u32.totalorder %s1229_s14, %s1353_s0 }
  0x4e   : > { %p918_p0 = pnand %p917_p12, %p916_p11  ;;  %p922_p13 = scmp.lt.u32.totalorder %s920_s17, %s915_s21 }
  0x4f   : > { %p924_p10 = scmp.lt.u32.totalorder %s915_s21, %s1229_s14 }
  0x50   : > { %p919_p1 = pneg %p918_p0  ;;  %p923_p6 = por %p922_p13, %p921_p4 }
  0x52   : > { %p925_p3 = por %p924_p10, %p923_p6 }
  0x54   : > { %p926_p5 = pnand %p925_p3, %p919_p1 }
  0x56   : > { %929 = shalt.err (!%p926_p5)
}
  0x57   : > { %s930_s23 = scalar_lea.vmem %s1237_s15, 128  ;;  %s1037_s10 = smov [#allocation3]  }
  0x58   : > { %p931_p9 = scmp.ne.s32.totalorder %s1237_s15, %s930_s23  ;;  %s935_s22 = sshll.u32 %s1037_s10, 4  ;;  %s936_s22 = int_to_ptr.vmem [resolvable:$false] %s935_s22 }
  0x59   : > { %s937_s18 = scalar_lea.vmem %s936_s22, 256  ;;  %p938_p7 = scmp.lt.s32.totalorder %s1237_s15, %s936_s22 }
  0x5a   : > { %p933_p11 = pnand %p931_p9, %p917_p12  ;;  %p939_p4 = scmp.lt.s32.totalorder %s937_s18, %s930_s23 }
  0x5c   : > { %p934_p0 = pneg %p933_p11  ;;  %p940_p13 = por %p939_p4, %p938_p7 }
  0x5e   : > { %p941_p6 = pnand %p940_p13, %p934_p0 }
  0x60   : > { %944 = shalt.err (!%p941_p6)
}
  0x61   : > { %789 = dma.hbm_to_vmem [thread:$0]  (!%p1233_p2), %s1229_s14, 128, %s1237_s15, %s288_s12  }
  0x62   : > { %307 = sbr.rel (%p1136_p8) target bundleno = 900 (0x384), region = 48  ;;  %s1267_s21 = sand.u32 (!%p1136_p8), 1, %s1015_s25  }
  0x63   : > { %s709_s17 = sshll.u32 (!%p1136_p8), %s1267_s21, 3  ;;  %s310_s30 = scalar_lea.sflag (!%p1136_p8), [#allocation4], %s1267_s21 }
  0x64   : > { %s313_s8 = scalar_lea.vmem (!%p1136_p8), [#allocation3], %s709_s17  ;;  %p1377_p7 = scmp.ne.s32.totalorder (!%p1136_p8), %s1370_s11, 0 }
  0x69   : > { %998 = dma.done.wait (%p1377_p7), %s310_s30, 128  }
  0x6a   : > { %1000 = vsyncadd (%p1377_p7), %s310_s30, 4294967168  ;;  %p1378_p2 = scmp.ne.s32.totalorder %s1368_s9, 0 }
  0x6c   : > { %1002 = dma.done.wait (%p1378_p2), [#allocation7], 1024  }
  0x6d   : > { %1004 = vsyncadd (%p1378_p2), [#allocation7], 4294966272  ;;  %v1038_v0 = vmov 0.0|0.0   ;;  %vm1039_vm0 = vmmov 0   ;;  %v1040_v1 = vmov 0.0   ;;  %v363_v2 = vld [vmem:[#allocation6] sm:$0xff] }
  0x6e   : > { %755 = vmatprep.subr.bf16.mxu0 %v1038_v0  ;;  %741 = vmatprep.mubr.msk.f32.mxu0 %vm1039_vm0, %v1040_v1  ;;  %v364_v3 = vld [vmem:[#allocation6 + $0x8] sm:$0xff]  ;;  %v365_v4 = vld [vmem:[#allocation6 + $0x10] sm:$0xff]  ;;  %v366_v6 = vld [vmem:[#allocation6 + $0x18] sm:$0xff]  ;;  %vm374_vm1 = vcmask 261120   ;;  %s720_s10 = sshll.u32 %s1023_s27, 7  ;;  %s354_s22 = scalar_lea.vmem [#allocation9], %s709_s17 }
  0x6f   : > { %761 = vmatprep.subr.bf16.mxu1 %v1038_v0  ;;  %752 = vmatprep.mubr.msk.f32.mxu1 %vm1039_vm0, %v1040_v1  ;;  %v756_v5 = vpack.c.bf16 %v364_v3, %v363_v2  ;;  %v759_v7 = vpack.c.bf16 %v366_v6, %v365_v4  ;;  %v362_v8 = vld [vmem:[%s313_s8] sm:$0xff]  ;;  %v713_v9 = vld [vmem:[%s1355_s2] ss:$0 sm:$0xff]  ;;  %v485_v24 = vld [vmem:[#allocation8] sm:$0xff]  ;;  %s587_s18 = sshll.u32 %s354_s22, 4  ;;  %vm570_vm2 = vcmask 523264   ;;  %s1304_s9 = scalar_lea.hbm %s1360_s7, %s720_s10  ;;  %s1306_s18 = int_to_ptr.vmem [resolvable:$true] %s587_s18 }
  0x70   : > { %v486_v25 = vld [vmem:[#allocation8 + $0x8] sm:$0xff]  ;;  %v487_v27 = vld [vmem:[#allocation8 + $0x10] sm:$0xff]  ;;  %v488_v28 = vld [vmem:[#allocation8 + $0x18] sm:$0xff]  ;;  %s573_s11 = scalar_lea.sflag [#allocation5], %s1267_s21  ;;  %s945_s27 = scalar_lea.vmem %s1306_s18, 128 }
  0x71   : > { %757 = vmatpush3.bf16.msra.mxu0 %v756_v5  ;;  %v762_v26 = vpack.c.bf16 %v486_v25, %v485_v24  ;;  %v765_v29 = vpack.c.bf16 %v488_v28, %v487_v27  ;;  %v715_v34 = vld [vmem:[%s1356_s3] ss:$0 sm:$0xff]  ;;  %p946_p8 = scmp.ne.s32.totalorder %s1306_s18, %s945_s27  ;;  %p1379_p12 = scmp.ne.s32.totalorder %s1375_s16, 0 }
  0x72   : > { %758 = vmatprep.subr.bf16.mxu0 %v1038_v0  ;;  %v716_v36 = vld [vmem:[%s1357_s4] ss:$0 sm:$0xff]  ;;  %s1041_s17 = smov [#allocation9]  }
  0x73   : > { %763 = vmatpush3.bf16.msra.mxu1 %v762_v26  ;;  %v717_v40 = vld [vmem:[%s1359_s6] ss:$0 sm:$0xff]  ;;  %p947_p1 = pnand %p946_p8, %p1379_p12  ;;  %s949_s13 = sshll.u32 %s1041_s17, 4  ;;  %s950_s13 = int_to_ptr.vmem [resolvable:$false] %s949_s13 }
  0x74   : > { %764 = vmatprep.subr.bf16.mxu1 %v1038_v0  ;;  %s951_s14 = scalar_lea.vmem %s950_s13, 256  ;;  %p952_p3 = scmp.lt.s32.totalorder %s1306_s18, %s950_s13 }
  0x75   : > { %760 = vmatpush3.bf16.msra.mxu0 %v759_v7  ;;  %p948_p10 = pneg %p947_p1  ;;  %p953_p5 = scmp.lt.s32.totalorder %s951_s14, %s945_s27 }
  0x77   : > { %766 = vmatpush3.bf16.msra.mxu1 %v765_v29  ;;  %p954_p9 = por %p953_p5, %p952_p3 }
  0x78   : > { %742 = vmatmul.mubr.msk.f32.vlgmr.msra.gmra.mrb[0].mxu0 %vm374_vm1, %v362_v8 }
  0x79   : > { %p955_p11 = pnand %p954_p9, %p948_p10 }
 0x14b   : > { %v444_v10 = vpop.f32.mrb[0].mxu0 }
 0x14c   : > { %v445_v11 = vadd.f32 %v713_v9, %v444_v10  ;;  %v743_v12 = vpop.f32.mrb[1].mxu0 }
 0x14e   : > { %v449_v13 = vmul.f32 0.70710677, %v445_v11  ;;  %v448_v15 = vmul.f32 0.5, %v445_v11 }
 0x150   : > { %855 = verf.f32 %v449_v13 }
 0x15a   : > { %v856_v14 = vpop.eup %855 }
 0x15b   : > { %v451_v16 = vadd.f32 1.0, %v856_v14 }
 0x15d   : > { %v452_v17 = vmul.f32 %v451_v16, %v448_v15 }
 0x15f   : > { %v453_v18 = vsel %vm374_vm1, %v452_v17, 0.0 }
 0x160   : > { %454 = vadd.xlane.f32.xlu0 %v453_v18 }
 0x1ed   : > { %v455_v19 = vpop.xlane.xlu0 %454 }
 0x1ee   : > { %v457_v20 = vmul.f32 0.03125, %v455_v19 }
 0x1f0   : > { %v458_v21 = vsub.f32 %v452_v17, %v457_v20 }
 0x1f2   : > { %v459_v22 = vmul.f32 %v458_v21, %v458_v21 }
 0x1f4   : > { %v460_v23 = vsel %vm374_vm1, %v459_v22, 0.0 }
 0x1f5   : > { %461 = vadd.xlane.f32.xlu0 %v460_v23 }
 0x282   : > { %v462_v30 = vpop.xlane.xlu0 %461 }
 0x283   : > { %v463_v31 = vmul.f32 0.03125, %v462_v30 }
 0x285   : > { %v464_v32 = vadd.f32 1e-05, %v463_v31 }
 0x287   : > { %857 = vrsqrt.f32 %v464_v32 }
 0x291   : > { %v858_v33 = vpop.eup %857 }
 0x292   : > { %v466_v35 = vmul.f32 %v858_v33, %v458_v21 }
 0x294   : > { %v474_v37 = vmul.f32 %v715_v34, %v466_v35 }
 0x296   : > { %v482_v38 = vadd.f32 %v716_v36, %v474_v37 }
 0x298   : > { %483 = vst.msk [vmem:[#allocation2] sm:$0xff] %vm374_vm1, %v482_v38 }
 0x29f   : > { %v484_v39 = vld [vmem:[#allocation2] sm:$0xff] }
 0x2a0   : > { %753 = vmatmul.mubr.msk.f32.vlgmr.msra.gmra.mrb[0].mxu1 %vm374_vm1, %v484_v39 }
 0x373   : > { %v566_v41 = vpop.f32.mrb[0].mxu1 }
 0x374   : > { %v567_v42 = vadd.f32 %v717_v40, %v566_v41  ;;  %v754_v43 = vpop.f32.mrb[1].mxu1 }
 0x376   : > { %571 = vst.msk [vmem:[%s354_s22] sm:$0xff] %vm570_vm2, %v567_v42 }
 0x377   : > { %958 = shalt.err (!%p955_p11)
}
 0x378   : > { %s959_s21 = scalar_lea.hbm %s1304_s9, 128  ;;  %s963_s12 = scalar_lea.hbm %s1360_s7, 256 }
 0x379   : > { %p960_p0 = scmp.ne.s32.totalorder %s1304_s9, %s959_s21  ;;  %p964_p6 = scmp.lt.u32.totalorder %s1304_s9, %s1360_s7 }
 0x37a   : > { %p965_p7 = scmp.lt.u32.totalorder %s963_s12, %s959_s21  ;;  %p967_p8 = scmp.lt.u32.totalorder %s959_s21, %s1304_s9 }
 0x37b   : > { %p961_p4 = pnand %p960_p0, %p1379_p12 }
 0x37c   : > { %p966_p2 = por %p965_p7, %p964_p6 }
 0x37d   : > { %p962_p13 = pneg %p961_p4 }
 0x37e   : > { %p968_p1 = por %p967_p8, %p966_p2 }
 0x380   : > { %p969_p10 = pnand %p968_p1, %p962_p13 }
 0x382   : > { %972 = shalt.err (!%p969_p10)
}
 0x383   : > { %777 = dma.vmem_to_hbm [thread:$0]  (%p1379_p12), %s1306_s18, 128, %s1304_s9, %s573_s11  }
 0x384 PF: > { %s1380_s22 = sld [smem:[#allocation13_spill]]  ;;  %s1381_s30 = sld [smem:[#allocation14_spill]] }
 0x385   : > { %p1383_p5 = scmp.ge.s32.totalorder %s1031_s29, 2 }
 0x38a   : > { %s599_s8 = sand.u32 1, %s1380_s22   ;;  %p1382_p3 = scmp.ne.s32.totalorder %s1381_s30, 0 }
 0x38b   : > { %s600_s27 = scalar_lea.sflag [#allocation5], %s599_s8 }
 0x38c   : > { %p791_p9 = pnand %p1383_p5, %p1382_p3 }
 0x38e   : > { %1006 = dma.done.wait (!%p791_p9), %s600_s27, 128  }
 0x38f   : > { %1008 = vsyncadd (!%p791_p9), %s600_s27, 4294967168  ;;  %s24_s29 = sadd.s32 1, %s1031_s29   ;;  %s1384_s24 = smov %s1015_s25 }
 0x390   : > { %p21_p11 = scmp.ge.s32.totalorder %s24_s29, 4   ;;  %s1385_s25 = smov %s1019_s26 }
 0x391   : > { %s1386_s26 = smov %s1224_s19  ;;  %s1387_s27 = smov %s1027_s28 }
 0x392   : > { %s1388_s28 = smov %s1390_s20  ;;  %23 = sbr.rel (!%p21_p11) target bundleno = 7 (0x7), region = 109 }
 0x399   :  { %605 = vsyncpa [#allocation4], 1 }
 0x39a   :  { %607 = vsyncpa [#allocation4 + $0x1], 1 }
 0x39b   :  { %608 = vsyncpa [#allocation7], 1 }
 0x39c   :  { %609 = vsyncpa [#allocation5], 1 }
 0x39d   :  { %611 = vsyncpa [#allocation5 + $0x1], 1 }

</bundles_post_ra>
